<compile_context>
chip_gen: v5e
topology: v5e:2x2
jax: 0.10.0
libtpu: 0.0.40
codegen_flags: <defaults>
</compile_context>

<pallas_src>
import functools

import jax
import jax.numpy as jnp
import numpy as np
from jax.experimental import pallas as pl
from jax.experimental.pallas import tpu as pltpu


def _bilinear_attention_kernel(*refs, has_mask):
    if has_mask:
        q_ref, w_ref, v_ref, m_ref, out_ref, attn_ref = refs
    else:
        q_ref, w_ref, v_ref, out_ref, attn_ref = refs
        m_ref = None

    q = q_ref[...]          # (TB, d_q)   compute dtype
    w = w_ref[...]          # (d_q, d_v)  resident across grid steps
    v = v_ref[...]          # (TB, l, d_v)

    # Bilinear score: attn[b,l] = (value @ W^T)[b,l,:] . query[b,:]
    #               = value[b,l,:] . (query @ W)[b,:]
    # Project query once on the MXU (f32 accumulate), then one batched contraction over d_v.
    proj = jnp.dot(q, w, preferred_element_type=jnp.float32)            # (TB, d_v) f32
    proj = proj.astype(v.dtype)

    # scores: 'bqd,bkd->bqk' with q == 1 -> (TB, 1, l) -> (TB, l); no (TB,l,d_v) temporary.
    scores = jnp.einsum('bqd,bkd->bqk', proj[:, None, :], v,
                        preferred_element_type=jnp.float32)[:, 0, :]    # (TB, l) f32

    # softmax over the sequence dim (dim=1); max/exp/sum stay in f32 (v5e has no bf16 VPU/EUP).
    mx = jnp.max(scores, axis=1, keepdims=True)
    e = jnp.exp(scores - mx)                                            # (TB, l) f32

    if has_mask:
        # torch: attn = softmax(s) * m; attn /= attn.sum(1).  The softmax 1/Z cancels, so fold
        # the mask into the un-normalized weights and normalize once.
        # (an all-zero mask row yields NaN, exactly like the torch module)
        e = e * m_ref[...].astype(jnp.float32)

    p = e * pl.reciprocal(jnp.sum(e, axis=1, keepdims=True), approx=True)  # EUP slot

    attn_ref[...] = p.astype(attn_ref.dtype)

    # pooled: 'bqk,bkd->bqd' with q == 1 -> (TB, d_v); again no broadcast temporary.
    pooled = jnp.einsum('bqk,bkd->bqd', p.astype(v.dtype)[:, None, :], v,
                        preferred_element_type=jnp.float32)[:, 0, :]     # (TB, d_v) f32
    out_ref[...] = pooled.astype(out_ref.dtype)


def _tpu_vmem_capacity_bytes():
    """Physical VMEM of the attached TPU generation; conservative fallback if unknown."""
    try:
        info = pltpu.get_tpu_info()
        return int(getattr(info, "vmem_capacity_bytes", 64 << 20))
    except Exception:
        return 64 << 20   # v7x per-TC size: safe everywhere


def _choose_block_b(bsz, l, d_v, d_q, value_itemsize):
    """Generation-aware batch tile + vmem limit.

    Picks the largest sublane-aligned batch tile whose double-buffered working set fits the
    per-generation budget, while keeping >=2 grid steps (DMA/compute overlap; v7x 2-TC sharding).
    """
    vmem_cap = _tpu_vmem_capacity_bytes()
    if vmem_cap >= (100 << 20):        # v5e / v6e: 128 MiB physical VMEM
        tile_budget = 44 << 20
        cap = 1024
        vmem_limit = 96 << 20
    else:                              # v7x (64 MiB) or unknown
        tile_budget = 22 << 20
        cap = 512
        vmem_limit = 48 << 20

    # per batch-row working set: double-buffered inputs (value dominates) + f32 outputs.
    per_row = 2 * value_itemsize * (l * d_v + d_q + l) + 4 * (d_v + l)
    bb = int(tile_budget // max(per_row, 1))
    bb = max(8, min(bb, cap))

    if bsz >= 16:
        # keep at least 2 grid steps so the pipeline overlaps and both v7x cores get work.
        bb = min(bb, max(8, (pl.cdiv(bsz, 2) // 8) * 8))

    if bb >= bsz:
        return bsz, vmem_limit
    return max(8, (bb // 8) * 8), vmem_limit


def bilinear_attention(query, value, weight, node_mask=None, *,
                       compute_dtype=jnp.bfloat16, block_b=None):
    """Pallas implementation of BilinearAttentionLayer.forward.

    query  : (b, d_q) f32
    value  : (b, l, d_v) f32
    weight : (d_q, d_v) f32  (torch nn.Linear(value_dim, query_dim, bias=False).weight layout)
    node_mask : optional (b, l); multiplied into the post-softmax attention then renormalized.
    compute_dtype : dtype used to FEED the MXU operands (default bf16; accumulation and the
                    softmax math are always f32). Pass jnp.float32 for bit-closer torch parity.

    returns (pooled (b, d_v) f32, attn (b, l) f32)
    """
    b, d_q = query.shape
    b2, l, d_v = value.shape
    assert b == b2
    assert weight.shape == (d_q, d_v)

    has_mask = node_mask is not None
    v_itemsize = jnp.dtype(compute_dtype).itemsize

    auto_bb, vmem_limit = _choose_block_b(b, l, d_v, d_q, v_itemsize)
    if block_b is None:
        block_b = auto_bb
    else:
        block_b = int(block_b)
        if block_b < b:
            block_b = max(8, (block_b // 8) * 8)   # sublane-aligned unless full-batch
    block_b = min(block_b, b)
    num_blocks = int(pl.cdiv(b, block_b))          # ragged last block handled by Mosaic masking

    q = query.astype(compute_dtype)
    v = value.astype(compute_dtype)
    w = weight.astype(compute_dtype)

    inputs = [q, w, v]
    in_specs = [
        pl.BlockSpec((block_b, d_q), lambda i: (i, 0)),
        pl.BlockSpec((d_q, d_v), lambda i: (0, 0)),          # weight resident across grid
        pl.BlockSpec((block_b, l, d_v), lambda i: (i, 0, 0)),
    ]
    if has_mask:
        # node_mask is a {0,1} keep-mask; feeding it in compute_dtype is exact.
        m = node_mask.astype(compute_dtype)
        inputs.append(m)
        in_specs.append(pl.BlockSpec((block_b, l), lambda i: (i, 0)))

    bytes_accessed = sum(int(np.prod(x.shape)) * x.dtype.itemsize for x in inputs)
    bytes_accessed += b * d_v * 4 + b * l * 4                 # f32 outputs
    cost = pl.CostEstimate(
        flops=2 * b * d_q * d_v + 4 * b * l * d_v,
        transcendentals=b * l,
        bytes_accessed=bytes_accessed,
    )

    kernel = functools.partial(_bilinear_attention_kernel, has_mask=has_mask)

    out, attn = pl.pallas_call(
        kernel,
        grid=(num_blocks,),
        in_specs=in_specs,
        out_specs=[
            pl.BlockSpec((block_b, d_v), lambda i: (i, 0)),
            pl.BlockSpec((block_b, l), lambda i: (i, 0)),
        ],
        out_shape=[
            jax.ShapeDtypeStruct((b, d_v), jnp.float32),
            jax.ShapeDtypeStruct((b, l), jnp.float32),
        ],
        compiler_params=pltpu.CompilerParams(
            dimension_semantics=("parallel",),
            vmem_limit_bytes=vmem_limit,
        ),
        cost_estimate=cost,
    )(*inputs)

    return out, attn


def _reference(query, value, weight, node_mask=None):
    # Pure-JAX mirror of the torch BilinearAttentionLayer.forward.
    lin = jnp.einsum('blv,qv->blq', value, weight)      # nn.Linear(value)  -> (b, l, q)
    attn = jnp.einsum('blq,bq->bl', lin, query)         # .bmm(query.unsqueeze(-1)).squeeze(-1)
    attn = jax.nn.softmax(attn, axis=1)
    if node_mask is not None:
        attn = attn * node_mask
        attn = attn / jnp.sum(attn, axis=1, keepdims=True)
    pooled = jnp.einsum('bl,blv->bv', attn, value)      # attn.unsqueeze(1).bmm(value).squeeze(1)
    return pooled, attn


if __name__ == "__main__":
    # Small shapes consistent with the module: batch=2, seq_len=8, query_dim=32, value_dim=32.
    b, l, d_q, d_v = 2, 8, 32, 32

    key = jax.random.PRNGKey(0)
    kq, kv, kw, _ = jax.random.split(key, 4)

    query = jax.random.normal(kq, (b, d_q), dtype=jnp.float32)
    value = jax.random.normal(kv, (b, l, d_v), dtype=jnp.float32)

    # torch nn.Linear(value_dim, query_dim, bias=False) default init: U(-1/sqrt(in), 1/sqrt(in)).
    bound = 1.0 / float(np.sqrt(d_v))
    weight = jax.random.uniform(kw, (d_q, d_v), minval=-bound, maxval=bound, dtype=jnp.float32)

    # node_mask: 1 = keep, 0 = drop (applied AFTER softmax, then renormalized, as in torch).
    node_mask = jnp.ones((b, l), dtype=jnp.float32).at[0, l - 2:].set(0.0)

    # --- f32 feed: tight parity vs the f32 torch reference (approx-reciprocal only deviation) ---
    out, attn = bilinear_attention(query, value, weight, node_mask=node_mask,
                                   compute_dtype=jnp.float32)
    out = jax.block_until_ready(out)
    attn = jax.block_until_ready(attn)
    ref_out, ref_attn = _reference(query, value, weight, node_mask=node_mask)
    np.testing.assert_allclose(np.asarray(attn), np.asarray(ref_attn), rtol=5e-3, atol=5e-3)
    np.testing.assert_allclose(np.asarray(out), np.asarray(ref_out), rtol=5e-3, atol=5e-3)

    out2, attn2 = bilinear_attention(query, value, weight, node_mask=None,
                                     compute_dtype=jnp.float32)
    out2 = jax.block_until_ready(out2)
    attn2 = jax.block_until_ready(attn2)
    ref_out2, ref_attn2 = _reference(query, value, weight, node_mask=None)
    np.testing.assert_allclose(np.asarray(attn2), np.asarray(ref_attn2), rtol=5e-3, atol=5e-3)
    np.testing.assert_allclose(np.asarray(out2), np.asarray(ref_out2), rtol=5e-3, atol=5e-3)

    # --- default bf16 feed (fast path); looser tolerance vs the f32 reference ---
    out3, attn3 = bilinear_attention(query, value, weight, node_mask=node_mask)
    out3 = jax.block_until_ready(out3)
    attn3 = jax.block_until_ready(attn3)
    np.testing.assert_allclose(np.asarray(attn3), np.asarray(ref_attn), rtol=1e-1, atol=5e-2)
    np.testing.assert_allclose(np.asarray(out3), np.asarray(ref_out), rtol=1e-1, atol=5e-2)

    # --- ragged-grid path (b not a multiple of block_b, no wrapper padding) ---
    b4 = 20
    q4 = jax.random.normal(jax.random.PRNGKey(1), (b4, d_q), dtype=jnp.float32)
    v4 = jax.random.normal(jax.random.PRNGKey(2), (b4, l, d_v), dtype=jnp.float32)
    out4, attn4 = bilinear_attention(q4, v4, weight, node_mask=None,
                                     compute_dtype=jnp.float32, block_b=8)
    out4 = jax.block_until_ready(out4)
    attn4 = jax.block_until_ready(attn4)
    ref_out4, ref_attn4 = _reference(q4, v4, weight, node_mask=None)
    np.testing.assert_allclose(np.asarray(attn4), np.asarray(ref_attn4), rtol=5e-3, atol=5e-3)
    np.testing.assert_allclose(np.asarray(out4), np.asarray(ref_out4), rtol=5e-3, atol=5e-3)

    print("KERNEL_OK")
</pallas_src>

<mosaic_0001>
module attributes {stable_mosaic.version = 11 : i64} {
  func.func @_bilinear_attention_kernel(%arg0: i32, %arg1: memref<2x32xf32, #tpu.memory_space<vmem>>, %arg2: memref<32x32xf32, #tpu.memory_space<vmem>>, %arg3: memref<2x8x32xf32, #tpu.memory_space<vmem>>, %arg4: memref<2x8xf32, #tpu.memory_space<vmem>>, %arg5: memref<2x32xf32, #tpu.memory_space<vmem>>, %arg6: memref<2x8xf32, #tpu.memory_space<vmem>>) attributes {dimension_semantics = [#tpu.dimension_semantics<parallel>], iteration_bounds = array<i64: 1>, scalar_prefetch = 0 : i64, scratch_operands = 0 : i64, tpu.core_type = #tpu.core_type<tc>, window_params = [{transform_indices = @transform_0, window_bounds = array<i64: 2, 32>}, {pipeline_mode = #tpu.pipeline_mode<synchronous>, transform_indices = @transform_1, window_bounds = array<i64: 32, 32>}, {transform_indices = @transform_2, window_bounds = array<i64: 2, 8, 32>}, {transform_indices = @transform_3, window_bounds = array<i64: 2, 8>}, {transform_indices = @transform_4, window_bounds = array<i64: 2, 32>}, {transform_indices = @transform_5, window_bounds = array<i64: 2, 8>}]} {
    %c0 = arith.constant 0 : index
    %c0_0 = arith.constant 0 : index
    %0 = vector.load %arg1[%c0, %c0_0] : memref<2x32xf32, #tpu.memory_space<vmem>>, vector<2x32xf32>
    %c0_1 = arith.constant 0 : index
    %c0_2 = arith.constant 0 : index
    %1 = vector.load %arg2[%c0_1, %c0_2] : memref<32x32xf32, #tpu.memory_space<vmem>>, vector<32x32xf32>
    %c0_3 = arith.constant 0 : index
    %c0_4 = arith.constant 0 : index
    %c0_5 = arith.constant 0 : index
    %2 = vector.load %arg3[%c0_3, %c0_4, %c0_5] : memref<2x8x32xf32, #tpu.memory_space<vmem>>, vector<2x8x32xf32>
    %cst = arith.constant dense<0.000000e+00> : vector<2x32xf32>
    %3 = tpu.matmul %0, %1, %cst {dimension_numbers = #tpu.dot_dimension_numbers<[1], [0], [0], [1], [0, 0, 1, 1], [], []>} : vector<2x32xf32>, vector<32x32xf32>, vector<2x32xf32> -> vector<2x32xf32>
    %4 = vector.shape_cast %3 : vector<2x32xf32> to vector<2x1x32xf32>
    "tpu.trace_start"() <{level = 10 : i32, message = "bqd,bkd->bqk"}> : () -> ()
    %cst_6 = arith.constant dense<0.000000e+00> : vector<2x1x8xf32>
    %5 = tpu.matmul %4, %2, %cst_6 {dimension_numbers = #tpu.dot_dimension_numbers<[2], [2], [1], [1], [0, 0, 0, 1, 1, 1], [0], [0]>} : vector<2x1x32xf32>, vector<2x8x32xf32>, vector<2x1x8xf32> -> vector<2x1x8xf32>
    "tpu.trace_stop"() : () -> ()
    %6 = vector.shape_cast %5 : vector<2x1x8xf32> to vector<2x8xf32>
    %cst_7 = arith.constant dense<0xFF800000> : vector<2xf32>
    %7 = vector.multi_reduction <maximumf>, %6, %cst_7 [1] : vector<2x8xf32> to vector<2xf32>
    %8 = vector.shape_cast %7 : vector<2xf32> to vector<2x1xf32>
    %9 = vector.broadcast %8 : vector<2x1xf32> to vector<2x8xf32>
    %10 = arith.subf %6, %9 : vector<2x8xf32>
    %11 = math.exp %10 : vector<2x8xf32>
    %c0_8 = arith.constant 0 : index
    %c0_9 = arith.constant 0 : index
    %12 = vector.load %arg4[%c0_8, %c0_9] : memref<2x8xf32, #tpu.memory_space<vmem>>, vector<2x8xf32>
    %13 = arith.mulf %11, %12 : vector<2x8xf32>
    %cst_10 = arith.constant dense<0.000000e+00> : vector<2xf32>
    %14 = vector.multi_reduction <add>, %13, %cst_10 [1] : vector<2x8xf32> to vector<2xf32>
    %15 = vector.shape_cast %14 : vector<2xf32> to vector<2x1xf32>
    %16 = tpu.reciprocal %15 {approx = true} : vector<2x1xf32> -> vector<2x1xf32>
    %17 = vector.broadcast %16 : vector<2x1xf32> to vector<2x8xf32>
    %18 = arith.mulf %13, %17 : vector<2x8xf32>
    %c0_11 = arith.constant 0 : index
    %c0_12 = arith.constant 0 : index
    %19 = vector.load %arg6[%c0_11, %c0_12] : memref<2x8xf32, #tpu.memory_space<vmem>>, vector<2x8xf32>
    tpu.vector_store %arg6[%c0_11, %c0_12], %18 {strides = array<i32>} : memref<2x8xf32, #tpu.memory_space<vmem>>, vector<2x8xf32>,
    %20 = vector.shape_cast %18 : vector<2x8xf32> to vector<2x1x8xf32>
    "tpu.trace_start"() <{level = 10 : i32, message = "bqk,bkd->bqd"}> : () -> ()
    %cst_13 = arith.constant dense<0.000000e+00> : vector<2x1x32xf32>
    %21 = tpu.matmul %20, %2, %cst_13 {dimension_numbers = #tpu.dot_dimension_numbers<[2], [1], [1], [2], [0, 0, 0, 1, 1, 2], [0], [0]>} : vector<2x1x8xf32>, vector<2x8x32xf32>, vector<2x1x32xf32> -> vector<2x1x32xf32>
    "tpu.trace_stop"() : () -> ()
    %22 = vector.shape_cast %21 : vector<2x1x32xf32> to vector<2x32xf32>
    %c0_14 = arith.constant 0 : index
    %c0_15 = arith.constant 0 : index
    %23 = vector.load %arg5[%c0_14, %c0_15] : memref<2x32xf32, #tpu.memory_space<vmem>>, vector<2x32xf32>
    tpu.vector_store %arg5[%c0_14, %c0_15], %22 {strides = array<i32>} : memref<2x32xf32, #tpu.memory_space<vmem>>, vector<2x32xf32>,
    return
  }
  func.func @transform_0(%arg0: i32) -> (i32, i32) {
    %c0_i32 = arith.constant 0 : i32
    %c0_i32_0 = arith.constant 0 : i32
    return %arg0, %c0_i32 : i32, i32
  }
  func.func @transform_1(%arg0: i32) -> (i32, i32) {
    %c0_i32 = arith.constant 0 : i32
    %c0_i32_0 = arith.constant 0 : i32
    %c0_i32_1 = arith.constant 0 : i32
    return %c0_i32, %c0_i32_0 : i32, i32
  }
  func.func @transform_2(%arg0: i32) -> (i32, i32, i32) {
    %c0_i32 = arith.constant 0 : i32
    %c0_i32_0 = arith.constant 0 : i32
    %c0_i32_1 = arith.constant 0 : i32
    return %arg0, %c0_i32, %c0_i32_0 : i32, i32, i32
  }
  func.func @transform_3(%arg0: i32) -> (i32, i32) {
    %c0_i32 = arith.constant 0 : i32
    %c0_i32_0 = arith.constant 0 : i32
    return %arg0, %c0_i32 : i32, i32
  }
  func.func @transform_4(%arg0: i32) -> (i32, i32) {
    %c0_i32 = arith.constant 0 : i32
    %c0_i32_0 = arith.constant 0 : i32
    return %arg0, %c0_i32 : i32, i32
  }
  func.func @transform_5(%arg0: i32) -> (i32, i32) {
    %c0_i32 = arith.constant 0 : i32
    %c0_i32_0 = arith.constant 0 : i32
    return %arg0, %c0_i32 : i32, i32
  }
}

</mosaic_0001>

<bundles_post_ra>
// kernel: tpu_custom_call.1
= control target key start
LH: loop header
LB: loop body
LE: loop exit
PB: predicated region body
PF: predicated region fallthrough
CT: control target
= control target key end

     0   :  { %11 = vsyncpa [#allocation3], 0  ;;  %s498_s0 = inlined_call_operand.hbm [shape: f32[2,32], index: 0, kind: input, shape index: {}]   ;;  %s499_s1 = inlined_call_operand.hbm [shape: f32[32,32], index: 1, kind: input, shape index: {}]   ;;  %s500_s2 = inlined_call_operand.hbm [shape: f32[2,8,32], index: 2, kind: input, shape index: {}]   ;;  %s501_s3 = inlined_call_operand.vmem [shape: f32[2,8], index: 3, kind: input, shape index: {}]   ;;  %s502_s4 = inlined_call_operand.hbm [shape: f32[2,32], index: 4, kind: output, shape index: {0}]   ;;  %s503_s5 = inlined_call_operand.hbm [shape: f32[2,8], index: 5, kind: output, shape index: {1}]  }
   0x1   :  { %12 = vsyncpa [#allocation6], 0 }
   0x2   :  { %13 = vsyncpa [#allocation4], 0  ;;  %s30_s20 = sshll.u32 %s499_s1, 4  ;;  %s31_s20 = int_to_ptr.hbm [resolvable:$true] %s30_s20 }
   0x3   :  { %14 = vsyncpa [#allocation10], 0  ;;  %s431_s21 = smov [#allocation5]   ;;  %s20_s25 = sshll.u32 %s498_s0, 4  ;;  %s21_s25 = int_to_ptr.hbm [resolvable:$true] %s20_s25 }
   0x4   :  { %s32_s22 = sshll.u32 %s431_s21, 4  ;;  %s432_s26 = smov 128   ;;  %s33_s22 = int_to_ptr.vmem [resolvable:$true] %s32_s22 }
   0x5   :  { %s433_s27 = smov 8   ;;  %s434_s28 = smov [#allocation2]  }
   0x6   :  { %38 = dma.hbm_to_vmem [thread:$0]  %s31_s20, 512, %s33_s22, [#allocation6], %s432_s26, %s432_s26, %s433_s27  }
   0x7   :  { %s22_s29 = sshll.u32 %s434_s28, 4  ;;  %s43_s7 = sshll.u32 %s500_s2, 4  ;;  %s23_s29 = int_to_ptr.vmem [resolvable:$true] %s22_s29  ;;  %s44_s7 = int_to_ptr.hbm [resolvable:$true] %s43_s7 }
   0x8   :  { %25 = dma.hbm_to_vmem [thread:$0]  %s21_s25, 32, %s23_s29, [#allocation3]  }
   0x9   :  { %s435_s1 = smov [#allocation7]  }
   0xa   :  { %s45_s8 = sshll.u32 %s435_s1, 4  ;;  %s46_s8 = int_to_ptr.vmem [resolvable:$true] %s45_s8 }
   0xb   :  { %51 = dma.hbm_to_vmem [thread:$0]  %s44_s7, 256, %s46_s8, [#allocation6], %s432_s26, %s432_s26, %s433_s27  }
   0xc   :  { %423 = dma.done.wait [#allocation3], 32  }
   0xd   :  { %424 = vsyncadd [#allocation3], 4294967264 }
   0xe   :  { %425 = dma.done.wait [#allocation6], 768  }
   0xf   :  { %426 = vsyncadd [#allocation6], 4294966528  ;;  %v70_v0 = vld [vmem:[#allocation5 + $0x18] sm:$0xff]  ;;  %v69_v1 = vld [vmem:[#allocation5 + $0x10] sm:$0xff]  ;;  %vm73_vm0 = vcmask 261120   ;;  %vm152_vm1 = vcmask 1041409  }
  0x10   :  { %89 = vmatpush.msra.mxu0 %v70_v0  ;;  %v71_v2 = vld [vmem:[#allocation7] sm:$0xff]  ;;  %v68_v3 = vld [vmem:[#allocation5 + $0x8] sm:$0xff]  ;;  %v66_v5 = vld [vmem:[#allocation2] sm:$0x3]  ;;  %vm155_vm2 = vcmask 58368   ;;  %vm197_vm3 = vcmask 64512  }
  0x11   :  { %284 = vmatpush.xpose.msk.msra.mxu1 %vm73_vm0, %v71_v2  ;;  %215 = vmatpush.msra.mxu3 %v71_v2  ;;  %v67_v4 = vld [vmem:[#allocation5] sm:$0xff]  ;;  %v72_v6 = vld [vmem:[#allocation7 + $0x8] sm:$0xff]  ;;  %v169_v20 = vld [vmem:[%s501_s3] sm:$0x3]  ;;  %s436_s3 = smov [#allocation9]   ;;  %s267_s12 = sshll.u32 %s503_s5, 4  ;;  %s268_s12 = int_to_ptr.hbm [resolvable:$true] %s267_s12 }
  0x12   :  { %90 = vmatpush.msra.mxu0 %v69_v1  ;;  %286 = vmatpush.xpose.msk.msra.mxu2 %vm73_vm0, %v72_v6  ;;  %v171_v21 = vrot.slane %v169_v20, 1  ;;  %s265_s9 = sshll.u32 %s436_s3, 4  ;;  %s437_s13 = smov [#allocation8]   ;;  %vm247_vm4 = vcmask 254976   ;;  %s266_s9 = int_to_ptr.vmem [resolvable:$true] %s265_s9 }
  0x13   :  { %237 = vmatpush.msrb.mxu3 %v72_v6  ;;  %s254_s14 = sshll.u32 %s437_s13, 4  ;;  %s256_s17 = sshll.u32 %s502_s4, 4  ;;  %s255_s14 = int_to_ptr.vmem [resolvable:$true] %s254_s14  ;;  %s257_s17 = int_to_ptr.hbm [resolvable:$true] %s256_s17 }
  0x14   :  { %91 = vmatpush.msra.mxu0 %v68_v3 }
  0x16   :  { %92 = vmatpush.msra.mxu0 %v67_v4 }
  0x17   :  { %283 = vmatmul.msk.f32.vlgmr.msra.gmra.mxu0 %vm73_vm0, %v66_v5 }
  0x94   :  { %v94_v7 = vpop.f32.mrf.mxu0 }
  0x95   :  { %v98_v8 = vrot.slane %v94_v7, 1  ;;  %285 = vmatmul.msk.f32.vlgmr.msra.gmra.mxu1 %vm73_vm0, %v94_v7 }
  0x97   :  { %287 = vmatmul.msk.f32.vlgmr.msra.gmra.mxu2 %vm73_vm0, %v98_v8 }
 0x112   :  { %v121_v11 = vpop.f32.mrf.mxu1 }
 0x11a   :  { %v146_v9 = vpop.f32.mrf.mxu2 }
 0x11b   :  { %v151_v10 = vrot.slane %v146_v9, 7 }
 0x11d   :  { %v153_v12 = vsel %vm152_vm1, %v151_v10, %v121_v11 }
 0x11e   :  { %v156_v13 = vsel %vm155_vm2, %v153_v12, -inf }
 0x11f   :  { %157 = vmax.xlane.f32.xlu0 %v156_v13 }
 0x192   :  { %v158_v14 = vpop.xlane.xlu0 %157 }
 0x193   :  { %v160_v15 = vrot.slane %v158_v14, 1  ;;  %v163_v16 = vsub.f32 %v121_v11, %v158_v14 }
 0x195   :  { %v164_v17 = vsub.f32 %v146_v9, %v160_v15  ;;  %v165_v18 = vmul.f32 1.442695, %v163_v16 }
 0x197   :  { %v167_v19 = vmul.f32 1.442695, %v164_v17  ;;  %297 = vpow2.f32 %v165_v18 }
 0x199   :  { %299 = vpow2.f32 %v167_v19 }
 0x19d   :  { %v298_v22 = vpop.eup %297 }
 0x19e   :  { %v174_v25 = vmul.f32 %v298_v22, %v169_v20 }
 0x19f   :  { %v300_v23 = vpop.eup %299 }
 0x1a0   :  { %v175_v24 = vmul.f32 %v300_v23, %v171_v21 }
 0x1a2   :  { %v178_v26 = vrot.slane %v175_v24, 7 }
 0x1a4   :  { %v179_v27 = vsel %vm152_vm1, %v178_v26, %v174_v25 }
 0x1a5   :  { %v181_v28 = vsel %vm155_vm2, %v179_v27, 0.0 }
 0x1a6   :  { %182 = vadd.xlane.f32.xlu0 %v181_v28 }
 0x219   :  { %v183_v29 = vpop.xlane.xlu0 %182 }
 0x21a   :  { %301 = vrcp.f32 %v183_v29 }
 0x220   :  { %v302_v30 = vpop.eup %301 }
 0x221   :  { %v186_v31 = vrot.slane %v302_v30, 1  ;;  %v189_v32 = vmul.f32 %v302_v30, %v174_v25 }
 0x223   :  { %288 = vmatmul.msk.f32.vlgmr.msra.gmra.mxu3 %vm197_vm3, %v189_v32  ;;  %v190_v33 = vmul.f32 %v186_v31, %v175_v24 }
 0x225   :  { %v193_v34 = vrot.slane %v190_v33, 7 }
 0x227   :  { %v194_v35 = vsel %vm152_vm1, %v193_v34, %v189_v32 }
 0x228   :  { %196 = vst.msk [vmem:[#allocation9] sm:$0x3] %vm155_vm2, %v194_v35 }
 0x229   :  { %270 = dma.vmem_to_hbm [thread:$0]  %s266_s9, 32, %s268_s12, [#allocation10]  }
 0x22b   :  { %289 = vmatmul.msk.f32.vlgmr.msrb.gmra.mxu3 %vm197_vm3, %v190_v33 }
 0x2a6   :  { %v217_v36 = vpop.f32.mrf.mxu3 }
 0x2ae   :  { %v239_v37 = vpop.f32.mrf.mxu3 }
 0x2af   :  { %v244_v38 = vrot.slane %v239_v37, 7 }
 0x2b1   :  { %v245_v39 = vsel %vm152_vm1, %v244_v38, %v217_v36 }
 0x2b2   :  { %248 = vst.msk [vmem:[#allocation8] sm:$0x3] %vm247_vm4, %v245_v39 }
 0x2b3   :  { %259 = dma.vmem_to_hbm [thread:$0]  %s255_s14, 32, %s257_s17, [#allocation4]  }
 0x2b4   :  { %427 = dma.done.wait [#allocation4], 32  }
 0x2b5   :  { %428 = vsyncadd [#allocation4], 4294967264 }
 0x2b6   :  { %429 = dma.done.wait [#allocation10], 32  }
 0x2b7   :  { %430 = vsyncadd [#allocation10], 4294967264 }
 0x2b8   :  { %279 = vsyncpa [#allocation3], 1 }
 0x2b9   :  { %280 = vsyncpa [#allocation6], 1 }
 0x2ba   :  { %281 = vsyncpa [#allocation4], 1 }
 0x2bb   :  { %282 = vsyncpa [#allocation10], 1 }

</bundles_post_ra>
